<compile_context>
chip_gen: v6e
topology: v6e:2x2x1
jax: 0.10.0
libtpu: 0.0.40
codegen_flags: <defaults>
</compile_context>

<pallas_src>
import functools

import jax
import jax.numpy as jnp
from jax.experimental import pallas as pl
from jax.experimental.pallas import tpu as pltpu


def _round_up(n, m):
    return ((n + m - 1) // m) * m


# ----------------------------------------------------------------------------
# Training path: p_losses (norm_spec -> q_sample -> denoise_fn -> L1 loss sum)
# One invocation, whole batch fused: [B*T, MP] slabs, single fused matmul.
# ----------------------------------------------------------------------------
def _train_loss_kernel(tnorm_ref,                   # [BT, 1]  f32  t/num_timesteps per row
                       gt_ref, noise_ref, cond_ref,  # [BT, MP], [BT, MP], [BT, HP]
                       smin_ref, smax_ref,           # [1, MP]
                       w_ref,                        # [MP+HP, MP] bf16 (Wx stacked on Wc)
                       wt_ref, b_ref,                # [1, MP] f32
                       loss_ref,                     # SMEM [1] f32 (un-normalized L1 sum)
                       *, mel_bins):
    tn = tnorm_ref[...]                      # [BT, 1]
    gt = gt_ref[...]                         # [BT, MP]
    x0 = noise_ref[...]                      # [BT, MP]
    smin = smin_ref[...]                     # [1, MP]
    smax = smax_ref[...]                     # [1, MP]

    mp = gt.shape[-1]
    lane = jax.lax.broadcasted_iota(jnp.int32, (1, mp), 1)
    lane_mask = lane < mel_bins              # real mel bins vs. lane padding

    # norm_spec (padded lanes zeroed so they contribute nothing to the loss)
    x1 = (gt - smin) / (smax - smin) * 2.0 - 1.0
    x1 = jnp.where(lane_mask, x1, 0.0)
    # q_sample: xt = t * x1 + (1 - t) * x0
    xt = tn * x1 + (1.0 - tn) * x0

    # synthetic denoise_fn — single fused matmul: [xt | cond] @ [[Wx],[Wc]]
    inp = jnp.concatenate([xt, cond_ref[...]], axis=-1).astype(jnp.bfloat16)
    h = (jnp.dot(inp, w_ref[...], preferred_element_type=jnp.float32)
         + wt_ref[...] * tn + b_ref[...])
    v_pred = jnp.tanh(h)

    ut = x1 - x0
    # single scalar write (lane reduce on XLU, then sublane reduce)
    loss_ref[0] = jnp.sum(jnp.abs(ut - v_pred))


def _flow_train_loss(tnorm, gt, noise, cond, smin, smax, w_cat, wt, bias,
                     *, mel_bins):
    kernel = functools.partial(_train_loss_kernel, mel_bins=mel_bins)
    vmem = pltpu.MemorySpace.VMEM
    loss = pl.pallas_call(
        kernel,
        out_shape=jax.ShapeDtypeStruct((1,), jnp.float32),
        in_specs=[pl.BlockSpec(memory_space=vmem) for _ in range(9)],
        out_specs=pl.BlockSpec(memory_space=pltpu.MemorySpace.SMEM),
    )(tnorm, gt, noise, cond, smin, smax, w_cat, wt, bias)
    return loss[0]


# ----------------------------------------------------------------------------
# Inference path: CFG Euler ODE integration (NeuralODE euler solver) + denorm.
# Conditioning projections hoisted out of the loop; loop statically unrolled.
# ----------------------------------------------------------------------------
def _euler_cfg_kernel(x0_ref,                       # [BT, MP]  f32
                      condcat_ref,                  # [2*BT, HP] f32 (cond rows, then ucond rows)
                      smin_ref, smax_ref,           # [1, MP]
                      wx_ref, wc_ref,               # [MP, MP] bf16, [HP, MP] bf16
                      wt_ref, b_ref,                # [1, MP] f32
                      out_ref,                      # [BT, MP] f32
                      *, K_step, num_timesteps, cfg_scale, rows):
    wx = wx_ref[...]
    wt = wt_ref[...]
    bb = b_ref[...]

    # Hoisted, loop-invariant conditioning projection: one stacked matmul for
    # both the conditional and unconditional branches.
    proj = jnp.dot(condcat_ref[...].astype(jnp.bfloat16), wc_ref[...],
                   preferred_element_type=jnp.float32)       # [2*BT, MP]
    cond_proj = proj[:rows]                                   # [BT, MP]
    ucond_proj = proj[rows:]                                  # [BT, MP]

    x = x0_ref[...]                                           # [BT, MP]
    dt = 1.0 / float(K_step)                                  # t_span = linspace(0,1,K_step+1)

    # Statically unrolled Euler loop (K_step is small & fixed); tn folds to
    # compile-time immediates and the scheduler can overlap successive steps.
    for k in range(K_step):
        # Wrapper_CFG: t_idx = long(s * num_timesteps), s = k / K_step
        t_idx = (k * num_timesteps) // K_step
        tn = float(t_idx) / float(num_timesteps)
        base = (jnp.dot(x.astype(jnp.bfloat16), wx,
                        preferred_element_type=jnp.float32)
                + wt * tn + bb)
        v_c = jnp.tanh(base + cond_proj)
        v_u = jnp.tanh(base + ucond_proj)
        v = v_u + cfg_scale * (v_c - v_u)
        x = x + dt * v

    # denorm_spec, written straight to the (lane-dense) output
    out_ref[...] = (x + 1.0) * 0.5 * (smax_ref[...] - smin_ref[...]) + smin_ref[...]


def _flow_sample(x0, cond_cat, smin, smax, wx, wc, wt, bias,
                 *, K_step, num_timesteps, cfg_scale):
    BT, MP = x0.shape
    kernel = functools.partial(_euler_cfg_kernel, K_step=K_step,
                               num_timesteps=num_timesteps,
                               cfg_scale=cfg_scale, rows=BT)
    vmem = pltpu.MemorySpace.VMEM
    # TODO(synk): if T grows large (v7x 64 MiB VMEM), tile the B*T row axis with
    # a grid instead of loading the full sequence as a single block.
    return pl.pallas_call(
        kernel,
        out_shape=jax.ShapeDtypeStruct((BT, MP), jnp.float32),
        in_specs=[pl.BlockSpec(memory_space=vmem) for _ in range(8)],
        out_specs=pl.BlockSpec(memory_space=vmem),
    )(x0, cond_cat, smin, smax, wx, wc, wt, bias)


# ----------------------------------------------------------------------------
# FlowMel module wrapper (plain-JAX glue: layout packing, RNG, parameter setup)
# ----------------------------------------------------------------------------
class FlowMelPallas:
    def __init__(self, out_dims, cond_dim, timesteps=100, K_step=8,
                 loss_type="l1", spec_min=None, spec_max=None, key=None):
        assert loss_type == "l1"          # hparams default 'l1'; 'l2' analogous
        self.mel_bins = int(out_dims)
        self.cond_dim = int(cond_dim)
        self.num_timesteps = int(timesteps)
        self.K_step = int(K_step)
        self.loss_type = loss_type

        M, H = self.mel_bins, self.cond_dim
        MP, HP = _round_up(M, 128), _round_up(H, 128)
        self.MP, self.HP = MP, HP

        smin = jnp.asarray(spec_min, jnp.float32).reshape(1, M)
        smax = jnp.asarray(spec_max, jnp.float32).reshape(1, M)
        # Lane-pad stats; padded range = 1 so norm_spec never divides by zero
        # in the padding lanes (their loss contribution is masked anyway).
        self.spec_min_p = jnp.pad(smin, ((0, 0), (0, MP - M)))
        self.spec_max_p = jnp.pad(smax, ((0, 0), (0, MP - M)), constant_values=1.0)

        # Deterministic synthetic denoiser parameters, zero-padded to 128-lane
        # multiples; stored as bf16 for the MXU (f32 accumulation in-kernel).
        k1, k2, k3 = jax.random.split(key, 3)
        wx = jax.random.normal(k1, (M, M), jnp.float32) / jnp.sqrt(float(M))
        wc = jax.random.normal(k2, (H, M), jnp.float32) / jnp.sqrt(float(H))
        wt = jax.random.normal(k3, (1, M), jnp.float32)
        wx_p = jnp.pad(wx, ((0, MP - M), (0, MP - M)))
        wc_p = jnp.pad(wc, ((0, HP - H), (0, MP - M)))
        self.wx = wx_p.astype(jnp.bfloat16)                              # [MP, MP]
        self.wc = wc_p.astype(jnp.bfloat16)                              # [HP, MP]
        self.w_cat = jnp.concatenate([wx_p, wc_p], 0).astype(jnp.bfloat16)  # [MP+HP, MP]
        self.wt = jnp.pad(wt, ((0, 0), (0, MP - M)))                     # [1, MP]
        self.bias = jnp.zeros((1, MP), jnp.float32)                      # [1, MP]

    # [B, T, M] -> lane-padded, batch-fused [B*T, MP]
    def _pack_mel(self, x):
        B, T, M = x.shape
        xp = jnp.pad(x.astype(jnp.float32), ((0, 0), (0, 0), (0, self.MP - M)))
        return xp.reshape(B * T, self.MP)

    # PyTorch-style [B, H, T] -> lane-padded, batch-fused [B*T, HP]
    def _pack_cond(self, c):
        B, H, T = c.shape
        ct = jnp.swapaxes(c, 1, 2).astype(jnp.float32)                   # [B, T, H]
        ctp = jnp.pad(ct, ((0, 0), (0, 0), (0, self.HP - H)))
        return ctp.reshape(B * T, self.HP)

    def __call__(self, cond, gt_mels, coarse_mels, ret, infer, ucond,
                 noise=None, cfg_scale=1.0, key=None):
        B, _, T = cond.shape
        M = self.mel_bins
        cond_2d = self._pack_cond(cond)                                  # [B*T, HP]

        if not infer:
            # TODO(synk): nonpadding frame mask of the original p_losses is not
            # plumbed through (reference defaults to unmasked .mean()).
            kt, kn = jax.random.split(key)
            t = jax.random.randint(kt, (B,), 0, self.num_timesteps, dtype=jnp.int32)
            noise_ = (jax.random.normal(kn, gt_mels.shape, jnp.float32)
                      if noise is None else noise)
            tnorm = jnp.repeat(t.astype(jnp.float32) / float(self.num_timesteps),
                               T)[:, None]                               # [B*T, 1]
            loss_sum = _flow_train_loss(
                tnorm, self._pack_mel(gt_mels), self._pack_mel(noise_), cond_2d,
                self.spec_min_p, self.spec_max_p,
                self.w_cat, self.wt, self.bias, mel_bins=M)
            ret["flow"] = loss_sum / float(B * T * M)                    # .mean()
        else:
            # TODO(synk): torchdyn NeuralODE adjoint/adaptive solvers have no
            # Pallas equivalent; fixed-step Euler (solver='euler') is fused
            # fully in-kernel instead.
            ucond_2d = self._pack_cond(ucond)
            cond_cat = jnp.concatenate([cond_2d, ucond_2d], axis=0)      # [2*B*T, HP]
            x0 = (jax.random.normal(key, coarse_mels.shape, jnp.float32)
                  if noise is None else noise)
            out_2d = _flow_sample(
                self._pack_mel(x0), cond_cat,
                self.spec_min_p, self.spec_max_p,
                self.wx, self.wc, self.wt, self.bias,
                K_step=self.K_step, num_timesteps=self.num_timesteps,
                cfg_scale=float(cfg_scale))
            ret["mel_out"] = out_2d.reshape(B, T, self.MP)[:, :, :M]
            ret["flow"] = 0.0
        return ret


if __name__ == "__main__":
    B, T, M, H = 2, 16, 32, 32          # batch, frames, mel bins, cond channels
    key = jax.random.PRNGKey(0)
    kp, kc, kg, kcm, ku, ktr, kinf = jax.random.split(key, 7)

    flow = FlowMelPallas(
        out_dims=M, cond_dim=H, timesteps=100, K_step=8, loss_type="l1",
        spec_min=jnp.linspace(-6.0, -4.0, M),
        spec_max=jnp.linspace(0.0, 1.0, M),
        key=kp)

    cond = jax.random.normal(kc, (B, H, T), jnp.float32)         # PyTorch [B, C, T]
    ucond = jax.random.normal(ku, (B, H, T), jnp.float32)
    gt_mels = jax.random.normal(kg, (B, T, M), jnp.float32) * 2.0 - 3.0
    coarse_mels = jax.random.normal(kcm, (B, T, M), jnp.float32) * 2.0 - 3.0

    # training branch (infer=False): ret['flow'] = L1 flow-matching loss
    ret = {}
    ret = flow(cond, gt_mels, coarse_mels, ret, infer=False, ucond=ucond, key=ktr)
    loss = jax.block_until_ready(ret["flow"])

    # inference branch (infer=True): CFG Euler ODE sampling -> ret['mel_out']
    ret2 = {}
    ret2 = flow(cond, gt_mels, coarse_mels, ret2, infer=True, ucond=ucond,
                cfg_scale=2.0, key=kinf)
    mel_out = jax.block_until_ready(ret2["mel_out"])

    assert loss.shape == () and jnp.isfinite(loss)
    assert mel_out.shape == (B, T, M) and bool(jnp.all(jnp.isfinite(mel_out)))
    print("KERNEL_OK")
</pallas_src>

<mosaic_0001>
module attributes {stable_mosaic.version = 11 : i64} {
  func.func @_train_loss_kernel(%arg0: memref<32x1xf32, #tpu.memory_space<vmem>>, %arg1: memref<32x128xf32, #tpu.memory_space<vmem>>, %arg2: memref<32x128xf32, #tpu.memory_space<vmem>>, %arg3: memref<32x128xf32, #tpu.memory_space<vmem>>, %arg4: memref<1x128xf32, #tpu.memory_space<vmem>>, %arg5: memref<1x128xf32, #tpu.memory_space<vmem>>, %arg6: memref<256x128xbf16, #tpu.memory_space<vmem>>, %arg7: memref<1x128xf32, #tpu.memory_space<vmem>>, %arg8: memref<1x128xf32, #tpu.memory_space<vmem>>, %arg9: memref<1xf32, #tpu.memory_space<smem>>) attributes {dimension_semantics = [], scalar_prefetch = 0 : i64, scratch_operands = 0 : i64, tpu.core_type = #tpu.core_type<tc>} {
    %c0 = arith.constant 0 : index
    %c0_0 = arith.constant 0 : index
    %0 = vector.load %arg0[%c0, %c0_0] : memref<32x1xf32, #tpu.memory_space<vmem>>, vector<32x1xf32>
    %c0_1 = arith.constant 0 : index
    %c0_2 = arith.constant 0 : index
    %1 = vector.load %arg1[%c0_1, %c0_2] : memref<32x128xf32, #tpu.memory_space<vmem>>, vector<32x128xf32>
    %c0_3 = arith.constant 0 : index
    %c0_4 = arith.constant 0 : index
    %2 = vector.load %arg2[%c0_3, %c0_4] : memref<32x128xf32, #tpu.memory_space<vmem>>, vector<32x128xf32>
    %c0_5 = arith.constant 0 : index
    %c0_6 = arith.constant 0 : index
    %3 = vector.load %arg4[%c0_5, %c0_6] : memref<1x128xf32, #tpu.memory_space<vmem>>, vector<1x128xf32>
    %c0_7 = arith.constant 0 : index
    %c0_8 = arith.constant 0 : index
    %4 = vector.load %arg5[%c0_7, %c0_8] : memref<1x128xf32, #tpu.memory_space<vmem>>, vector<1x128xf32>
    %5 = tpu.iota {dimensions = array<i32: 1>} : vector<1x128xi32>
    %c32_i32 = arith.constant 32 : i32
    %6 = vector.broadcast %c32_i32 : i32 to vector<1x128xi32>
    %7 = arith.cmpi slt, %5, %6 : vector<1x128xi32>
    %8 = vector.broadcast %3 : vector<1x128xf32> to vector<32x128xf32>
    %9 = arith.subf %1, %8 : vector<32x128xf32>
    %10 = arith.subf %4, %3 : vector<1x128xf32>
    %11 = vector.broadcast %10 : vector<1x128xf32> to vector<32x128xf32>
    %12 = arith.divf %9, %11 : vector<32x128xf32>
    %cst = arith.constant 2.000000e+00 : f32
    %13 = vector.broadcast %cst : f32 to vector<32x128xf32>
    %14 = arith.mulf %12, %13 : vector<32x128xf32>
    %cst_9 = arith.constant 1.000000e+00 : f32
    %15 = vector.broadcast %cst_9 : f32 to vector<32x128xf32>
    %16 = arith.subf %14, %15 : vector<32x128xf32>
    %cst_10 = arith.constant 0.000000e+00 : f32
    %17 = vector.shape_cast %7 : vector<1x128xi1> to vector<1x128xi1>
    %18 = vector.broadcast %17 : vector<1x128xi1> to vector<32x128xi1>
    %19 = vector.broadcast %cst_10 : f32 to vector<32x128xf32>
    %20 = arith.select %18, %16, %19 : vector<32x128xi1>, vector<32x128xf32>
    %21 = vector.broadcast %0 : vector<32x1xf32> to vector<32x128xf32>
    %22 = arith.mulf %21, %20 : vector<32x128xf32>
    %cst_11 = arith.constant 1.000000e+00 : f32
    %23 = vector.broadcast %cst_11 : f32 to vector<32x1xf32>
    %24 = arith.subf %23, %0 : vector<32x1xf32>
    %25 = vector.broadcast %24 : vector<32x1xf32> to vector<32x128xf32>
    %26 = arith.mulf %25, %2 : vector<32x128xf32>
    %27 = arith.addf %22, %26 : vector<32x128xf32>
    %c0_12 = arith.constant 0 : index
    %c0_13 = arith.constant 0 : index
    %28 = vector.load %arg3[%c0_12, %c0_13] : memref<32x128xf32, #tpu.memory_space<vmem>>, vector<32x128xf32>
    %29 = tpu.concatenate %27, %28 in 1 : vector<32x128xf32>, vector<32x128xf32> -> vector<32x256xf32>
    %30 = arith.truncf %29 : vector<32x256xf32> to vector<32x256xbf16>
    %c0_14 = arith.constant 0 : index
    %c0_15 = arith.constant 0 : index
    %31 = vector.load %arg6[%c0_14, %c0_15] : memref<256x128xbf16, #tpu.memory_space<vmem>>, vector<256x128xbf16>
    %cst_16 = arith.constant dense<0.000000e+00> : vector<32x128xf32>
    %32 = tpu.matmul %30, %31, %cst_16 {dimension_numbers = #tpu.dot_dimension_numbers<[1], [0], [0], [1], [0, 0, 1, 1], [], []>} : vector<32x256xbf16>, vector<256x128xbf16>, vector<32x128xf32> -> vector<32x128xf32>
    %c0_17 = arith.constant 0 : index
    %c0_18 = arith.constant 0 : index
    %33 = vector.load %arg7[%c0_17, %c0_18] : memref<1x128xf32, #tpu.memory_space<vmem>>, vector<1x128xf32>
    %34 = vector.broadcast %33 : vector<1x128xf32> to vector<32x128xf32>
    %35 = vector.broadcast %0 : vector<32x1xf32> to vector<32x128xf32>
    %36 = arith.mulf %34, %35 : vector<32x128xf32>
    %37 = arith.addf %32, %36 : vector<32x128xf32>
    %c0_19 = arith.constant 0 : index
    %c0_20 = arith.constant 0 : index
    %38 = vector.load %arg8[%c0_19, %c0_20] : memref<1x128xf32, #tpu.memory_space<vmem>>, vector<1x128xf32>
    %39 = vector.broadcast %38 : vector<1x128xf32> to vector<32x128xf32>
    %40 = arith.addf %37, %39 : vector<32x128xf32>
    %41 = math.tanh %40 : vector<32x128xf32>
    %42 = arith.subf %20, %2 : vector<32x128xf32>
    %43 = arith.subf %42, %41 : vector<32x128xf32>
    %44 = math.absf %43 : vector<32x128xf32>
    %45 = vector.shape_cast %44 : vector<32x128xf32> to vector<1x32x128xf32>
    %cst_21 = arith.constant dense<0.000000e+00> : vector<1xf32>
    %46 = vector.multi_reduction <add>, %45, %cst_21 [1, 2] : vector<1x32x128xf32> to vector<1xf32>
    %47 = vector.shape_cast %46 : vector<1xf32> to vector<1x1x1xf32>
    %48 = vector.extract %47[0, 0, 0] : f32 from vector<1x1x1xf32>
    %c0_22 = arith.constant 0 : index
    %49 = memref.load %arg9[%c0_22] : memref<1xf32, #tpu.memory_space<smem>>
    memref.store %48, %arg9[%c0_22] : memref<1xf32, #tpu.memory_space<smem>>
    return
  }
}

</mosaic_0001>

<bundles_post_ra>
// kernel: tpu_custom_call.1
= control target key start
LH: loop header
LB: loop body
LE: loop exit
PB: predicated region body
PF: predicated region fallthrough
CT: control target
= control target key end

     0   :  { %14 = vsyncpa [#allocation3], 0  ;;  %s746_s0 = inlined_call_operand.vmem [shape: f32[32,1], index: 0, kind: input, shape index: {}]   ;;  %s747_s1 = inlined_call_operand.vmem [shape: f32[32,128], index: 1, kind: input, shape index: {}]   ;;  %s748_s2 = inlined_call_operand.hbm [shape: f32[32,128], index: 2, kind: input, shape index: {}]   ;;  %s749_s3 = inlined_call_operand.hbm [shape: f32[32,128], index: 3, kind: input, shape index: {}]   ;;  %s750_s4 = inlined_call_operand.vmem [shape: f32[1,128], index: 4, kind: input, shape index: {}]   ;;  %s751_s5 = inlined_call_operand.vmem [shape: f32[1,128], index: 5, kind: input, shape index: {}]   ;;  %s752_s6 = inlined_call_operand.hbm [shape: bf16[256,128], index: 6, kind: input, shape index: {}]   ;;  %s753_s7 = inlined_call_operand.vmem [shape: f32[1,128], index: 7, kind: input, shape index: {}]   ;;  %s754_s8 = inlined_call_operand.vmem [shape: f32[1,128], index: 8, kind: input, shape index: {}]   ;;  %s755_s9 = inlined_call_operand.hbm [shape: f32[1], index: 9, kind: output, shape index: {}]  }
   0x1   :  { %15 = vsyncpa [#allocation6], 0 }
   0x2   :  { %16 = vsyncpa [#allocation4], 0  ;;  %s615_s30 = smov [#allocation5]   ;;  %s616_s11 = smov [#allocation2]  }
   0x3   :  { %s38_s10 = sshll.u32 %s615_s30, 4  ;;  %s26_s12 = sshll.u32 %s616_s11, 4  ;;  %s39_s10 = int_to_ptr.vmem [resolvable:$true] %s38_s10  ;;  %s27_s12 = int_to_ptr.vmem [resolvable:$true] %s26_s12 }
   0x4   :  { %s549_s13 = scalar_lea.vmem %s39_s10, 512  ;;  %p554_p1 = scmp.lt.s32.totalorder %s39_s10, %s39_s10 }
   0x5   :  { %p550_p0 = scmp.ne.s32.totalorder %s39_s10, %s549_s13  ;;  %p555_p2 = scmp.lt.s32.totalorder %s549_s13, %s549_s13 }
   0x7   :  { %p556_p3 = por %p555_p2, %p554_p1 }
   0x9   :  { %p557_p4 = pnand %p556_p3, %p550_p0 }
   0xb   :  { %560 = shalt.err (!%p557_p4)
}
   0xc   :  { %s617_s14 = smov 128   ;;  %s618_s15 = smov 8  }
   0xd   :  { %44 = dma.hbm_to_vmem [thread:$0]  %s749_s3, 512, %s39_s10, [#allocation6], %s617_s14, %s617_s14, %s618_s15  }
   0xe   :  { %s569_s18 = scalar_lea.vmem %s27_s12, 512  ;;  %p574_p6 = scmp.lt.s32.totalorder %s27_s12, %s27_s12 }
   0xf   :  { %p570_p5 = scmp.ne.s32.totalorder %s27_s12, %s569_s18  ;;  %p575_p7 = scmp.lt.s32.totalorder %s569_s18, %s569_s18 }
  0x11   :  { %p576_p8 = por %p575_p7, %p574_p6 }
  0x13   :  { %p577_p9 = pnand %p576_p8, %p570_p5 }
  0x15   :  { %580 = shalt.err (!%p577_p9)
}
  0x16   :  { %32 = dma.hbm_to_vmem [thread:$0]  %s748_s2, 512, %s27_s12, [#allocation3], %s617_s14, %s617_s14, %s618_s15  }
  0x17   :  { %s619_s21 = smov [#allocation7]  }
  0x18   :  { %s54_s22 = sshll.u32 %s619_s21, 4  ;;  %s55_s22 = int_to_ptr.vmem [resolvable:$true] %s54_s22 }
  0x19   :  { %s589_s23 = scalar_lea.vmem %s55_s22, 2048  ;;  %p594_p11 = scmp.lt.s32.totalorder %s55_s22, %s55_s22 }
  0x1a   :  { %p590_p10 = scmp.ne.s32.totalorder %s55_s22, %s589_s23  ;;  %p595_p12 = scmp.lt.s32.totalorder %s589_s23, %s589_s23 }
  0x1c   :  { %p596_p13 = por %p595_p12, %p594_p11 }
  0x1e   :  { %p597_p0 = pnand %p596_p13, %p590_p10 }
  0x20   :  { %600 = shalt.err (!%p597_p0)
}
  0x21   :  { %s620_s3 = smov 64   ;;  %s621_s24 = smov 4  }
  0x22   :  { %60 = dma.hbm_to_vmem [thread:$0]  %s752_s6, 2048, %s55_s22, [#allocation6], %s620_s3, %s620_s3, %s621_s24  }
  0x23   :  { %609 = dma.done.wait [#allocation3], 512  }
  0x24   :  { %610 = vsyncadd [#allocation3], 4294966784 }
  0x25   :  { %611 = dma.done.wait [#allocation6], 2560  }
  0x26   :  { %612 = vsyncadd [#allocation6], 4294964736  ;;  %v622_v0 = vmov 0   ;;  %v78_v1 = vld [vmem:[%s746_s0 + $0x18] sm:$0xff]  ;;  %v75_v2 = vld [vmem:[%s746_s0] sm:$0xff]  ;;  %v89_v31 = vlaneseq }
  0x27   :  { %514 = vset.pattern.permute.xlu1 %v622_v0  ;;  %513 = vset.pattern.permute.xlu0 %v622_v0  ;;  %v152_v3 = vsub.f32 1.0, %v75_v2  ;;  %v76_v4 = vld [vmem:[%s746_s0 + $0x8] sm:$0xff]  ;;  %v515_v5 = vld [vmem:[#allocation7 + $0x78] sm:$0xff]   ;;  %v517_v7 = vld [vmem:[#allocation7 + $0x70] sm:$0xff]   ;;  %v155_v12 = vsub.f32 1.0, %v78_v1 }
  0x28   :  { %145 = vperm.xlu1 %514, %v78_v1   ;;  %130 = vperm.xlu0 %513, %v75_v2   ;;  %v516_v6 = vld [vmem:[#allocation7 + $0x38] sm:$0xff]   ;;  %v153_v8 = vsub.f32 1.0, %v76_v4  ;;  %v77_v9 = vld [vmem:[%s746_s0 + $0x10] sm:$0xff]  ;;  %v519_v11 = vld [vmem:[#allocation7 + $0x68] sm:$0xff]   ;;  %v94_v32 = vshrl.u32 %v89_v31, 7  ;;  %v90_v54 = vand.u32 127, %v89_v31 }
  0x29   :  { %458 = vmatprep.subr.bf16.mxu0 %v515_v5  ;;  %486 = vmatprep.subr.bf16.mxu1 %v515_v5  ;;  %v518_v10 = vld [vmem:[#allocation7 + $0x30] sm:$0xff]   ;;  %v154_v13 = vsub.f32 1.0, %v77_v9  ;;  %v520_v14 = vld [vmem:[#allocation7 + $0x28] sm:$0xff]   ;;  %v521_v15 = vld [vmem:[#allocation7 + $0x60] sm:$0xff]  }
  0x2a   :  { %459 = vmatpush3.bf16.msra.mxu0 %v516_v6  ;;  %494 = vmatpush3.bf16.msra.mxu1 %v516_v6  ;;  %v522_v16 = vld [vmem:[#allocation7 + $0x20] sm:$0xff]   ;;  %v523_v17 = vld [vmem:[#allocation7 + $0x58] sm:$0xff]   ;;  %v525_v19 = vld [vmem:[#allocation7 + $0x50] sm:$0xff]   ;;  %v95_v35 = vsub.s32 0, %v94_v32  ;;  %vm91_vm0 = vcmp.lt.s32.totalorder %v90_v54, 32 }
  0x2b   :  { %460 = vmatprep.subr.bf16.mxu0 %v517_v7  ;;  %487 = vmatprep.subr.bf16.mxu1 %v517_v7  ;;  %v524_v18 = vld [vmem:[#allocation7 + $0x18] sm:$0xff]   ;;  %v184_v20 = vld [vmem:[#allocation5] sm:$0xff]  ;;  %v185_v21 = vld [vmem:[#allocation5 + $0x8] sm:$0xff] }
  0x2c   :  { %135 = vperm.xlu0 %513, %v76_v4   ;;  %158 = vperm.xlu1 %514, %v152_v3   ;;  %v526_v22 = vld [vmem:[#allocation7 + $0x10] sm:$0xff]   ;;  %v189_v23 = vpack.c.bf16 %v185_v21, %v184_v20  ;;  %v187_v25 = vld [vmem:[#allocation5 + $0x18] sm:$0xff]  ;;  %v527_v26 = vld [vmem:[#allocation7 + $0x48] sm:$0xff]  }
  0x2d   :  { %v186_v24 = vld [vmem:[#allocation5 + $0x10] sm:$0xff]  ;;  %v528_v28 = vld [vmem:[#allocation7 + $0x8] sm:$0xff]   ;;  %v529_v29 = vld [vmem:[#allocation7 + $0x40] sm:$0xff]  }
  0x2e   :  { %461 = vmatpush3.bf16.msra.mxu0 %v518_v10  ;;  %495 = vmatpush3.bf16.msra.mxu1 %v518_v10  ;;  %v191_v27 = vpack.c.bf16 %v187_v25, %v186_v24  ;;  %v530_v30 = vld [vmem:[#allocation7] sm:$0xff]   ;;  %v80_v40 = vld [vmem:[%s747_s1 + $0x8] sm:$0xff]  ;;  %v82_v41 = vld [vmem:[%s747_s1 + $0x18] sm:$0xff] }
  0x2f   :  { %462 = vmatprep.subr.bf16.mxu0 %v519_v11  ;;  %488 = vmatprep.subr.bf16.mxu1 %v519_v11  ;;  %v87_v33 = vld [vmem:[%s750_s4] sm:$0x1]  ;;  %v81_v45 = vld [vmem:[%s747_s1 + $0x10] sm:$0xff]  ;;  %v721_v4 = vld [vmem:[#allocation2 + $0x8] sm:$0xff] }
  0x30   :  { %140 = vperm.xlu0 %513, %v77_v9   ;;  %163 = vperm.xlu1 %514, %v153_v8   ;;  %v88_v34 = vld [vmem:[%s751_s5] sm:$0x1]  ;;  %v96_v38 = vrot.slane %v87_v33, %v95_v35 }
  0x31   :  { %363 = vmatprep.mubr.bf16.mxu0 %v189_v23  ;;  %371 = vmatprep.mubr.bf16.mxu1 %v191_v27  ;;  %v102_v36 = vsub.f32 %v88_v34, %v87_v33  ;;  %v79_v39 = vld [vmem:[%s747_s1] sm:$0xff] }
  0x32   :  { %463 = vmatpush3.bf16.msra.mxu0 %v520_v14  ;;  %496 = vmatpush3.bf16.msra.mxu1 %v520_v14  ;;  %v98_v42 = vsub.f32 %v79_v39, %v96_v38  ;;  %v99_v43 = vsub.f32 %v80_v40, %v96_v38  ;;  %v101_v46 = vsub.f32 %v82_v41, %v96_v38  ;;  %v713_v62 = vld [vmem:[#allocation2] sm:$0xff]  ;;  %v86_v14 = vld [vmem:[#allocation2 + $0x18] sm:$0xff] }
  0x33   :  { %464 = vmatprep.subr.bf16.mxu0 %v521_v15  ;;  %489 = vmatprep.subr.bf16.mxu1 %v521_v15  ;;  %v107_v37 = vrot.slane %v102_v36, %v95_v35  ;;  %v100_v49 = vsub.f32 %v81_v45, %v96_v38  ;;  %v440_v27 = vld [vmem:[%s753_s7] ss:$0 sm:$0xff] }
  0x34   :  { %168 = vperm.xlu0 %513, %v154_v13   ;;  %173 = vperm.xlu1 %514, %v155_v12   ;;  %v85_v13 = vld [vmem:[#allocation2 + $0x10] sm:$0xff]  ;;  %v457_v32 = vld [vmem:[%s754_s8] ss:$0 sm:$0xff]  ;;  %s623_s8 = smov [#allocation8]  }
  0x35   :  { %531 = vrcp.f32 %v107_v37 }
  0x36   :  { %465 = vmatpush3.bf16.msra.mxu0 %v522_v16  ;;  %497 = vmatpush3.bf16.msra.mxu1 %v522_v16 }
  0x37   :  { %466 = vmatprep.subr.bf16.mxu0 %v523_v17  ;;  %490 = vmatprep.subr.bf16.mxu1 %v523_v17 }
  0x3a   :  { %467 = vmatpush3.bf16.msra.mxu0 %v524_v18  ;;  %498 = vmatpush3.bf16.msra.mxu1 %v524_v18 }
  0x3b   :  { %468 = vmatprep.subr.bf16.mxu0 %v525_v19  ;;  %491 = vmatprep.subr.bf16.mxu1 %v525_v19 }
  0x3e   :  { %469 = vmatpush3.bf16.msra.mxu0 %v526_v22  ;;  %499 = vmatpush3.bf16.msra.mxu1 %v526_v22 }
  0x3f   :  { %470 = vmatprep.subr.bf16.mxu0 %v527_v26  ;;  %492 = vmatprep.subr.bf16.mxu1 %v527_v26 }
  0x42   :  { %471 = vmatpush3.bf16.msra.mxu0 %v528_v28  ;;  %500 = vmatpush3.bf16.msra.mxu1 %v528_v28  ;;  %v532_v44 = vpop.eup %531 }
  0x43   :  { %472 = vmatprep.subr.bf16.mxu0 %v529_v29  ;;  %493 = vmatprep.subr.bf16.mxu1 %v529_v29  ;;  %v110_v47 = vmul.f32 %v532_v44, %v98_v42  ;;  %v111_v48 = vmul.f32 %v532_v44, %v99_v43  ;;  %v113_v50 = vmul.f32 %v532_v44, %v101_v46 }
  0x44   :  { %v112_v53 = vmul.f32 %v532_v44, %v100_v49 }
  0x45   :  { %v114_v51 = vmul.f32 2.0, %v110_v47  ;;  %v115_v52 = vmul.f32 2.0, %v111_v48  ;;  %v117_v57 = vmul.f32 2.0, %v113_v50 }
  0x46   :  { %473 = vmatpush3.bf16.msra.mxu0 %v530_v30  ;;  %501 = vmatpush3.bf16.msra.mxu1 %v530_v30  ;;  %v116_v60 = vmul.f32 2.0, %v112_v53 }
  0x47   :  { %v436_v58 = vadd.f32 -1.0, %v114_v51  ;;  %v437_v59 = vadd.f32 -1.0, %v115_v52  ;;  %v439_v0 = vadd.f32 -1.0, %v117_v57 }
  0x48   :  { %v438_v3 = vadd.f32 -1.0, %v116_v60 }
  0x49   :  { %v716_v1 = vsel %vm91_vm0, %v436_v58, 0.0  ;;  %v719_v2 = vsel %vm91_vm0, %v437_v59, 0.0  ;;  %v725_v8 = vsel %vm91_vm0, %v439_v0, 0.0 }
  0x4a   :  { %v126_v12 = vsel %vm91_vm0, %v438_v3, 0.0  ;;  %v395_v53 = vsub.f32 %v716_v1, %v713_v62 }
  0x4b   :  { %v397_v57 = vsub.f32 %v126_v12, %v85_v13 }
  0xa3   :  { %v146_v55 = vpop.permute.xlu1 %145  ;;  %v131_v56 = vpop.permute.xlu0 %130 }
  0xa4   :  { %v148_v9 = vmul.f32 %v131_v56, %v716_v1  ;;  %v151_v17 = vmul.f32 %v146_v55, %v725_v8  ;;  %v231_v30 = vmul.f32 %v440_v27, %v131_v56  ;;  %v234_v47 = vmul.f32 %v440_v27, %v146_v55 }
  0xa5   :  { %v396_v56 = vsub.f32 %v719_v2, %v721_v4  ;;  %v398_v55 = vsub.f32 %v725_v8, %v86_v14 }
  0xa7   :  { %v136_v61 = vpop.permute.xlu0 %135  ;;  %v159_v63 = vpop.permute.xlu1 %158 }
  0xa8   :  { %v176_v5 = vmul.f32 %v159_v63, %v713_v62  ;;  %v149_v10 = vmul.f32 %v136_v61, %v719_v2  ;;  %v232_v36 = vmul.f32 %v440_v27, %v136_v61 }
  0xaa   :  { %v180_v15 = vadd.f32 %v176_v5, %v148_v9 }
  0xab   :  { %v141_v6 = vpop.permute.xlu0 %140  ;;  %v164_v7 = vpop.permute.xlu1 %163 }
  0xac   :  { %v177_v11 = vmul.f32 %v164_v7, %v721_v4  ;;  %v150_v20 = vmul.f32 %v141_v6, %v126_v12  ;;  %v233_v39 = vmul.f32 %v440_v27, %v141_v6 }
  0xae   :  { %v181_v16 = vadd.f32 %v177_v11, %v149_v10 }
  0xaf   :  { %v169_v18 = vpop.permute.xlu0 %168  ;;  %v174_v19 = vpop.permute.xlu1 %173 }
  0xb0   :  { %v178_v21 = vmul.f32 %v169_v18, %v85_v13  ;;  %v179_v22 = vmul.f32 %v174_v19, %v86_v14  ;;  %v188_v23 = vpack.c.bf16 %v181_v16, %v180_v15 }
  0xb2   :  { %v182_v24 = vadd.f32 %v178_v21, %v150_v20  ;;  %v183_v25 = vadd.f32 %v179_v22, %v151_v17  ;;  %364 = vmatmul.mubr.bf16.vlgmr.msra.gmra.mxu0 %v188_v23 }
  0xb4   :  { %v190_v26 = vpack.c.bf16 %v183_v25, %v182_v24 }
  0xb6   :  { %372 = vmatmul.mubr.bf16.vlgmr.msra.gmra.mxu1 %v190_v26 }
 0x172   :  { %v474_v28 = vpop.f32.mrf.mxu0 }
 0x174   :  { %v475_v29 = vpop.f32.mrf.mxu0 }
 0x175   :  { %v476_v31 = vadd.f32 %v475_v29, %v474_v28 }
 0x176   :  { %v477_v33 = vpop.f32.mrf.mxu0  ;;  %v480_v34 = vpop.f32.mrf.mxu1 }
 0x177   :  { %v366_v35 = vadd.f32 %v476_v31, %v231_v30 }
 0x178   :  { %v478_v37 = vpop.f32.mrf.mxu0  ;;  %v481_v38 = vpop.f32.mrf.mxu1 }
 0x179   :  { %v387_v40 = vadd.f32 %v457_v32, %v366_v35  ;;  %v479_v41 = vadd.f32 %v478_v37, %v477_v33  ;;  %v482_v42 = vadd.f32 %v481_v38, %v480_v34 }
 0x17a   :  { %v483_v43 = vpop.f32.mrf.mxu1 }
 0x17b   :  { %533 = vtanh.f32 %v387_v40  ;;  %v369_v44 = vadd.f32 %v479_v41, %v232_v36  ;;  %v374_v45 = vadd.f32 %v482_v42, %v233_v39 }
 0x17c   :  { %v484_v46 = vpop.f32.mrf.mxu1 }
 0x17d   :  { %v388_v48 = vadd.f32 %v457_v32, %v369_v44  ;;  %v389_v49 = vadd.f32 %v457_v32, %v374_v45  ;;  %v485_v50 = vadd.f32 %v484_v46, %v483_v43 }
 0x17f   :  { %535 = vtanh.f32 %v388_v48  ;;  %v377_v51 = vadd.f32 %v485_v50, %v234_v47 }
 0x180   :  { %537 = vtanh.f32 %v389_v49 }
 0x181   :  { %v390_v52 = vadd.f32 %v457_v32, %v377_v51 }
 0x183   :  { %539 = vtanh.f32 %v390_v52 }
 0x188   :  { %v534_v54 = vpop.eup %533 }
 0x189   :  { %v399_v58 = vsub.f32 %v395_v53, %v534_v54 }
 0x18b   :  { %v403_v0 = vand.u32 2147483647, %v399_v58 }
 0x18c   :  { %v536_v59 = vpop.eup %535 }
 0x18d   :  { %v538_v60 = vpop.eup %537  ;;  %v400_v61 = vsub.f32 %v396_v56, %v536_v59 }
 0x18e   :  { %v401_v63 = vsub.f32 %v397_v57, %v538_v60 }
 0x18f   :  { %v404_v3 = vand.u32 2147483647, %v400_v61 }
 0x190   :  { %v540_v5 = vpop.eup %539  ;;  %v405_v7 = vand.u32 2147483647, %v401_v63 }
 0x191   :  { %v402_v6 = vsub.f32 %v398_v55, %v540_v5  ;;  %v407_v9 = vadd.f32 %v404_v3, %v403_v0 }
 0x193   :  { %v406_v10 = vand.u32 2147483647, %v402_v6  ;;  %v408_v62 = vadd.f32 %v407_v9, %v405_v7 }
 0x195   :  { %v409_v1 = vadd.f32 %v408_v62, %v406_v10 }
 0x197   :  { %410 = vadd.xlane.f32.xlu0 %v409_v1 }
 0x220   :  { %v411_v11 = vpop.xlane.xlu0 %410 }
 0x221   :  { %v412_v2 = vrot.slane %v411_v11, 4 }
 0x223   :  { %v413_v4 = vadd.f32 %v412_v2, %v411_v11 }
 0x225   :  { %v414_v12 = vrot.slane %v413_v4, 2 }
 0x227   :  { %v415_v13 = vadd.f32 %v414_v12, %v413_v4 }
 0x229   :  { %v416_v15 = vrot.slane %v415_v13, 1 }
 0x22b   :  { %v417_v16 = vadd.f32 %v416_v15, %v415_v13 }
 0x22d   :  { %502 = vpush %v417_v16 }
 0x25e   :  { %s503_s7 = spop %502 }
 0x25f   :  { %420 = sst [smem:[#allocation8]] %s503_s7 }
 0x260   :  { %428 = dma.smem_to_hbm %s623_s8, 16, %s755_s9, [#allocation4]  }
 0x261   :  { %613 = dma.done.wait [#allocation4], 16  }
 0x262   :  { %614 = vsyncadd [#allocation4], 4294967280 }
 0x263   :  { %432 = sfence }
 0x264   :  { %433 = vsyncpa [#allocation3], 1 }
 0x265   :  { %434 = vsyncpa [#allocation6], 1 }
 0x266   :  { %435 = vsyncpa [#allocation4], 1 }

</bundles_post_ra>
